<compile_context>
chip_gen: v7x
topology: tpu7x:2x2x1
jax: 0.10.0
libtpu: 0.0.40
codegen_flags: <defaults>
</compile_context>

<pallas_src>
import functools

import jax
import jax.numpy as jnp
from jax.experimental import pallas as pl
from jax.experimental.pallas import tpu as pltpu


def _eda_kernel(x_ref, w0_ref, wst_ref, bias_ref, mask_ref, o_ref,
                *, H, W, Cin, K, d):
    # x_ref:    (1, Cin, H*W)  f32   input image, channels on sublanes
    # w0_ref:   (K, Cin)       bf16  1x1 conv weight with BN0 scale folded in
    # wst_ref:  (4, K, 3K)     bf16  fused 3-tap weights [3x1, 1x3*s2, 3x1(d), 1x3(d)*s4]
    # bias_ref: (3, K, 1)      f32   BN shifts for layers 0 / 2 / 4
    # mask_ref: (4, H*W)       bf16  col-validity masks [w>=1, w<W-1, w>=d, w<W-d]
    # o_ref:    (1, K+Cin, H*W) f32
    HW = H * W

    x_f32 = x_ref[0]                               # (Cin, HW) residual (kept exact)
    x = x_f32.astype(jnp.bfloat16)

    def shift(h, s):
        # t[:, i] = h[:, i - s], zero-filled (s static; s > 0 shifts right).
        z = jnp.zeros((h.shape[0], abs(s)), h.dtype)
        if s > 0:
            return jnp.concatenate([z, h[:, :HW - s]], axis=1)
        return jnp.concatenate([h[:, -s:], z], axis=1)

    def conv3x1(h, dl, wf):
        # (3,1) conv, padding (dl,0), dilation dl: row offsets (-dl, 0, +dl).
        # Shifts are multiples of W, so columns never mix and the zero fill
        # is exactly the conv zero padding.
        cols = jnp.concatenate([shift(h, dl * W), h, shift(h, -dl * W)], axis=0)
        return jnp.dot(wf, cols, preferred_element_type=jnp.float32)

    def conv1x3(h, dl, wf, mrow):
        # (1,3) conv, padding (0,dl), dilation dl: col offsets (-dl, 0, +dl).
        # Masks zero the taps that would wrap across a row boundary.
        left = shift(h, dl) * mask_ref[mrow:mrow + 1, :]
        right = shift(h, -dl) * mask_ref[mrow + 1:mrow + 2, :]
        cols = jnp.concatenate([left, h, right], axis=0)          # (3K, HW)
        return jnp.dot(wf, cols, preferred_element_type=jnp.float32)

    # 1) ConvBNAct(Cin -> K, 1x1): BN scale pre-folded into w0, shift + ReLU here.
    h = jnp.maximum(
        jnp.dot(w0_ref[...], x, preferred_element_type=jnp.float32) + bias_ref[0],
        0.0)
    # 2) Conv2d(K, K, (3,1), padding=(1,0)), no BN / act.
    h = conv3x1(h.astype(jnp.bfloat16), 1, wst_ref[0])
    # 3) ConvBNAct(K, K, (1,3)): scale folded into weights, shift + ReLU.
    h = jnp.maximum(conv1x3(h.astype(jnp.bfloat16), 1, wst_ref[1], 0) + bias_ref[1],
                    0.0)
    # 4) Conv2d(K, K, (3,1), dilation=d, padding=(d,0)), no BN / act.
    h = conv3x1(h.astype(jnp.bfloat16), d, wst_ref[2])
    # 5) ConvBNAct(K, K, (1,3), dilation=d): scale folded, shift + ReLU.
    h = jnp.maximum(conv1x3(h.astype(jnp.bfloat16), d, wst_ref[3], 2) + bias_ref[2],
                    0.0)

    # channel concat [conv_out | residual] -> single lane-dense store.
    o_ref[0] = jnp.concatenate([h, x_f32], axis=0).astype(o_ref.dtype)


def eda_module_forward(x_nchw, w0, bn0, w1, w2, bn2, w3, w4, bn4,
                       *, dilation=1, eps=1e-5, act_type="relu"):
    """EDAModule forward. Input NCHW, output NCHW with k + in_channels channels."""
    assert act_type == "relu"          # Activation('relu') in the reference module
    N, Cin, H, W = x_nchw.shape
    K = w0.shape[0]
    Cout = K + Cin
    HW = H * W
    d = int(dilation)
    assert 0 < d < min(H, W)

    def fold(bn):
        g, b, m, v = bn
        s = g.astype(jnp.float32) * jax.lax.rsqrt(v.astype(jnp.float32) + eps)
        return s, b.astype(jnp.float32) - m.astype(jnp.float32) * s

    s0, b0 = fold(bn0)
    s2, b2 = fold(bn2)
    s4, b4 = fold(bn4)

    # BN scale folded into conv weights; fused 3-tap weights with taps along K-dim.
    w0t = (w0[:, :, 0, 0].astype(jnp.float32) * s0[:, None]).astype(jnp.bfloat16)

    def fuse_v(w):                         # (K,K,3,1) -> (K, 3K), tap j = row offset (j-1)*dl
        return jnp.transpose(w[:, :, :, 0].astype(jnp.float32), (0, 2, 1)).reshape(K, 3 * K)

    def fuse_h(w, s=None):                 # (K,K,1,3) -> (K, 3K), tap j = col offset (j-1)*dl
        wf = w[:, :, 0, :].astype(jnp.float32)
        if s is not None:
            wf = wf * s[:, None, None]
        return jnp.transpose(wf, (0, 2, 1)).reshape(K, 3 * K)

    w_stack = jnp.stack([fuse_v(w1), fuse_h(w2, s2), fuse_v(w3), fuse_h(w4, s4)],
                        axis=0).astype(jnp.bfloat16)                       # (4, K, 3K)
    bias = jnp.stack([b0, b2, b4], axis=0)[:, :, None].astype(jnp.float32)  # (3, K, 1)

    # column-validity masks for the two horizontal convs (dilation 1 and d).
    col = jnp.arange(HW, dtype=jnp.int32) % W
    masks = jnp.stack([col >= 1, col < W - 1, col >= d, col < W - d],
                      axis=0).astype(jnp.bfloat16)                          # (4, HW)

    # channels on sublanes, pixels on lanes: NCHW -> (N, C, H*W) is a pure reshape.
    x_in = x_nchw.reshape(N, Cin, HW).astype(jnp.float32)

    kernel = functools.partial(_eda_kernel, H=H, W=W, Cin=Cin, K=K, d=d)

    out = pl.pallas_call(
        kernel,
        out_shape=jax.ShapeDtypeStruct((N, Cout, HW), jnp.float32),
        grid_spec=pltpu.PrefetchScalarGridSpec(
            num_scalar_prefetch=0,
            grid=(N,),
            in_specs=[
                pl.BlockSpec((1, Cin, HW), lambda n: (n, 0, 0)),
                pl.BlockSpec((K, Cin), lambda n: (0, 0)),
                pl.BlockSpec((4, K, 3 * K), lambda n: (0, 0, 0)),
                pl.BlockSpec((3, K, 1), lambda n: (0, 0, 0)),
                pl.BlockSpec((4, HW), lambda n: (0, 0)),
            ],
            out_specs=pl.BlockSpec((1, Cout, HW), lambda n: (n, 0, 0)),
        ),
        compiler_params=pltpu.CompilerParams(
            dimension_semantics=("parallel",)),
    )(x_in, w0t, w_stack, bias, masks)

    return out.reshape(N, Cout, H, W)


def _eda_reference(x, w0, bn0, w1, w2, bn2, w3, w4, bn4, *, dilation, eps):
    """Pure-JAX f32 reference matching the PyTorch module (eval-mode BN)."""
    def conv(h, w, pad, dil):
        return jax.lax.conv_general_dilated(
            h, w, window_strides=(1, 1), padding=pad, rhs_dilation=dil,
            dimension_numbers=("NCHW", "OIHW", "NCHW"))

    def bn_relu(h, p):
        g, b, m, v = p
        s = g * jax.lax.rsqrt(v + eps)
        return jax.nn.relu(h * s[None, :, None, None]
                           + (b - m * s)[None, :, None, None])

    d = dilation
    h = bn_relu(conv(x, w0, [(0, 0), (0, 0)], (1, 1)), bn0)
    h = conv(h, w1, [(1, 1), (0, 0)], (1, 1))
    h = bn_relu(conv(h, w2, [(0, 0), (1, 1)], (1, 1)), bn2)
    h = conv(h, w3, [(d, d), (0, 0)], (d, d))
    h = bn_relu(conv(h, w4, [(0, 0), (d, d)], (d, d)), bn4)
    return jnp.concatenate([h, x], axis=1)


if __name__ == "__main__":
    # EDAModule(in_channels=4, k=8, dilation=2, act_type='relu'), small shapes.
    N, Cin, H, W = 2, 4, 16, 16
    K = 8
    dilation = 2
    eps = 1e-5

    keys = jax.random.split(jax.random.PRNGKey(0), 18)
    x = jax.random.normal(keys[0], (N, Cin, H, W), jnp.float32)
    w0 = 0.1 * jax.random.normal(keys[1], (K, Cin, 1, 1), jnp.float32)
    w1 = 0.1 * jax.random.normal(keys[2], (K, K, 3, 1), jnp.float32)
    w2 = 0.1 * jax.random.normal(keys[3], (K, K, 1, 3), jnp.float32)
    w3 = 0.1 * jax.random.normal(keys[4], (K, K, 3, 1), jnp.float32)
    w4 = 0.1 * jax.random.normal(keys[5], (K, K, 1, 3), jnp.float32)

    def make_bn(k1, k2, k3, k4):
        gamma = 1.0 + 0.1 * jax.random.normal(k1, (K,), jnp.float32)
        beta = 0.1 * jax.random.normal(k2, (K,), jnp.float32)
        mean = 0.1 * jax.random.normal(k3, (K,), jnp.float32)
        var = jax.random.uniform(k4, (K,), jnp.float32, minval=0.5, maxval=1.5)
        return gamma, beta, mean, var

    bn0 = make_bn(*keys[6:10])
    bn2 = make_bn(*keys[10:14])
    bn4 = make_bn(*keys[14:18])

    out = eda_module_forward(x, w0, bn0, w1, w2, bn2, w3, w4, bn4,
                             dilation=dilation, eps=eps, act_type="relu")
    out = jax.block_until_ready(out)
    assert out.shape == (N, K + Cin, H, W)

    ref = _eda_reference(x, w0, bn0, w1, w2, bn2, w3, w4, bn4,
                         dilation=dilation, eps=eps)
    max_err = float(jnp.max(jnp.abs(out - ref)))
    assert max_err < 5e-2, f"max abs err {max_err}"          # bf16-matmul tolerance
    assert bool(jnp.all(out[:, K:] == x))                    # residual is bit-exact
    print("KERNEL_OK")
</pallas_src>

<mosaic_0001>
module attributes {stable_mosaic.version = 11 : i64} {
  func.func @_eda_kernel(%arg0: i32, %arg1: memref<1x4x256xf32, #tpu.memory_space<vmem>>, %arg2: memref<8x4xbf16, #tpu.memory_space<vmem>>, %arg3: memref<4x8x24xbf16, #tpu.memory_space<vmem>>, %arg4: memref<3x8x1xf32, #tpu.memory_space<vmem>>, %arg5: memref<4x256xbf16, #tpu.memory_space<vmem>>, %arg6: memref<1x12x256xf32, #tpu.memory_space<vmem>>) attributes {dimension_semantics = [#tpu.dimension_semantics<parallel>], iteration_bounds = array<i64: 2>, scalar_prefetch = 0 : i64, scratch_operands = 0 : i64, tpu.core_type = #tpu.core_type<tc>, window_params = [{transform_indices = @transform_0, window_bounds = array<i64: 1, 4, 256>}, {pipeline_mode = #tpu.pipeline_mode<synchronous>, transform_indices = @transform_1, window_bounds = array<i64: 8, 4>}, {pipeline_mode = #tpu.pipeline_mode<synchronous>, transform_indices = @transform_2, window_bounds = array<i64: 4, 8, 24>}, {pipeline_mode = #tpu.pipeline_mode<synchronous>, transform_indices = @transform_3, window_bounds = array<i64: 3, 8, 1>}, {pipeline_mode = #tpu.pipeline_mode<synchronous>, transform_indices = @transform_4, window_bounds = array<i64: 4, 256>}, {transform_indices = @transform_5, window_bounds = array<i64: 1, 12, 256>}]} {
    %c0 = arith.constant 0 : index
    %c0_0 = arith.constant 0 : index
    %c0_1 = arith.constant 0 : index
    %0 = vector.load %arg1[%c0, %c0_0, %c0_1] : memref<1x4x256xf32, #tpu.memory_space<vmem>>, vector<1x4x256xf32>
    %1 = vector.shape_cast %0 : vector<1x4x256xf32> to vector<4x256xf32>
    %2 = arith.truncf %1 : vector<4x256xf32> to vector<4x256xbf16>
    %c0_2 = arith.constant 0 : index
    %c0_3 = arith.constant 0 : index
    %3 = vector.load %arg2[%c0_2, %c0_3] : memref<8x4xbf16, #tpu.memory_space<vmem>>, vector<8x4xbf16>
    %cst = arith.constant dense<0.000000e+00> : vector<8x256xf32>
    %4 = tpu.matmul %3, %2, %cst {dimension_numbers = #tpu.dot_dimension_numbers<[1], [0], [0], [1], [0, 0, 1, 1], [], []>} : vector<8x4xbf16>, vector<4x256xbf16>, vector<8x256xf32> -> vector<8x256xf32>
    %c0_4 = arith.constant 0 : index
    %c0_5 = arith.constant 0 : index
    %c0_6 = arith.constant 0 : index
    %5 = vector.load %arg4[%c0_4, %c0_5, %c0_6] : memref<3x8x1xf32, #tpu.memory_space<vmem>>, vector<1x8x1xf32>
    %6 = vector.shape_cast %5 : vector<1x8x1xf32> to vector<8x1xf32>
    %7 = vector.broadcast %6 : vector<8x1xf32> to vector<8x256xf32>
    %8 = arith.addf %4, %7 : vector<8x256xf32>
    %cst_7 = arith.constant 0.000000e+00 : f32
    %9 = vector.broadcast %cst_7 : f32 to vector<8x256xf32>
    %10 = arith.maximumf %8, %9 : vector<8x256xf32>
    %11 = arith.truncf %10 : vector<8x256xf32> to vector<8x256xbf16>
    %c0_8 = arith.constant 0 : index
    %c0_9 = arith.constant 0 : index
    %c0_10 = arith.constant 0 : index
    %12 = vector.load %arg3[%c0_8, %c0_9, %c0_10] : memref<4x8x24xbf16, #tpu.memory_space<vmem>>, vector<1x8x24xbf16>
    %13 = vector.shape_cast %12 : vector<1x8x24xbf16> to vector<8x24xbf16>
    %cst_11 = arith.constant 0.000000e+00 : bf16
    %14 = vector.broadcast %cst_11 : bf16 to vector<8x16xbf16>
    %15 = vector.extract_strided_slice %11 {offsets = [0, 0], sizes = [8, 240], strides = [1, 1]} : vector<8x256xbf16> to vector<8x240xbf16>
    %16 = tpu.concatenate %14, %15 in 1 : vector<8x16xbf16>, vector<8x240xbf16> -> vector<8x256xbf16>
    %cst_12 = arith.constant 0.000000e+00 : bf16
    %17 = vector.broadcast %cst_12 : bf16 to vector<8x16xbf16>
    %18 = vector.extract_strided_slice %11 {offsets = [0, 16], sizes = [8, 240], strides = [1, 1]} : vector<8x256xbf16> to vector<8x240xbf16>
    %19 = tpu.concatenate %18, %17 in 1 : vector<8x240xbf16>, vector<8x16xbf16> -> vector<8x256xbf16>
    %20 = tpu.concatenate %16, %11, %19 in 0 : vector<8x256xbf16>, vector<8x256xbf16>, vector<8x256xbf16> -> vector<24x256xbf16>
    %cst_13 = arith.constant dense<0.000000e+00> : vector<8x256xf32>
    %21 = tpu.matmul %13, %20, %cst_13 {dimension_numbers = #tpu.dot_dimension_numbers<[1], [0], [0], [1], [0, 0, 1, 1], [], []>} : vector<8x24xbf16>, vector<24x256xbf16>, vector<8x256xf32> -> vector<8x256xf32>
    %22 = arith.truncf %21 : vector<8x256xf32> to vector<8x256xbf16>
    %c1 = arith.constant 1 : index
    %c0_14 = arith.constant 0 : index
    %c0_15 = arith.constant 0 : index
    %23 = vector.load %arg3[%c1, %c0_14, %c0_15] : memref<4x8x24xbf16, #tpu.memory_space<vmem>>, vector<1x8x24xbf16>
    %24 = vector.shape_cast %23 : vector<1x8x24xbf16> to vector<8x24xbf16>
    %cst_16 = arith.constant 0.000000e+00 : bf16
    %25 = vector.broadcast %cst_16 : bf16 to vector<8x1xbf16>
    %26 = vector.extract_strided_slice %22 {offsets = [0, 0], sizes = [8, 255], strides = [1, 1]} : vector<8x256xbf16> to vector<8x255xbf16>
    %27 = tpu.concatenate %25, %26 in 1 : vector<8x1xbf16>, vector<8x255xbf16> -> vector<8x256xbf16>
    %c0_17 = arith.constant 0 : index
    %c0_18 = arith.constant 0 : index
    %28 = vector.load %arg5[%c0_17, %c0_18] : memref<4x256xbf16, #tpu.memory_space<vmem>>, vector<1x256xbf16>
    %29 = vector.broadcast %28 : vector<1x256xbf16> to vector<8x256xbf16>
    %30 = arith.mulf %27, %29 : vector<8x256xbf16>
    %cst_19 = arith.constant 0.000000e+00 : bf16
    %31 = vector.broadcast %cst_19 : bf16 to vector<8x1xbf16>
    %32 = vector.extract_strided_slice %22 {offsets = [0, 1], sizes = [8, 255], strides = [1, 1]} : vector<8x256xbf16> to vector<8x255xbf16>
    %33 = tpu.concatenate %32, %31 in 1 : vector<8x255xbf16>, vector<8x1xbf16> -> vector<8x256xbf16>
    %c1_20 = arith.constant 1 : index
    %c0_21 = arith.constant 0 : index
    %34 = vector.load %arg5[%c1_20, %c0_21] : memref<4x256xbf16, #tpu.memory_space<vmem>>, vector<1x256xbf16>
    %35 = vector.broadcast %34 : vector<1x256xbf16> to vector<8x256xbf16>
    %36 = arith.mulf %33, %35 : vector<8x256xbf16>
    %37 = tpu.concatenate %30, %22, %36 in 0 : vector<8x256xbf16>, vector<8x256xbf16>, vector<8x256xbf16> -> vector<24x256xbf16>
    %cst_22 = arith.constant dense<0.000000e+00> : vector<8x256xf32>
    %38 = tpu.matmul %24, %37, %cst_22 {dimension_numbers = #tpu.dot_dimension_numbers<[1], [0], [0], [1], [0, 0, 1, 1], [], []>} : vector<8x24xbf16>, vector<24x256xbf16>, vector<8x256xf32> -> vector<8x256xf32>
    %c1_23 = arith.constant 1 : index
    %c0_24 = arith.constant 0 : index
    %c0_25 = arith.constant 0 : index
    %39 = vector.load %arg4[%c1_23, %c0_24, %c0_25] : memref<3x8x1xf32, #tpu.memory_space<vmem>>, vector<1x8x1xf32>
    %40 = vector.shape_cast %39 : vector<1x8x1xf32> to vector<8x1xf32>
    %41 = vector.broadcast %40 : vector<8x1xf32> to vector<8x256xf32>
    %42 = arith.addf %38, %41 : vector<8x256xf32>
    %cst_26 = arith.constant 0.000000e+00 : f32
    %43 = vector.broadcast %cst_26 : f32 to vector<8x256xf32>
    %44 = arith.maximumf %42, %43 : vector<8x256xf32>
    %45 = arith.truncf %44 : vector<8x256xf32> to vector<8x256xbf16>
    %c2 = arith.constant 2 : index
    %c0_27 = arith.constant 0 : index
    %c0_28 = arith.constant 0 : index
    %46 = vector.load %arg3[%c2, %c0_27, %c0_28] : memref<4x8x24xbf16, #tpu.memory_space<vmem>>, vector<1x8x24xbf16>
    %47 = vector.shape_cast %46 : vector<1x8x24xbf16> to vector<8x24xbf16>
    %cst_29 = arith.constant 0.000000e+00 : bf16
    %48 = vector.broadcast %cst_29 : bf16 to vector<8x32xbf16>
    %49 = vector.extract_strided_slice %45 {offsets = [0, 0], sizes = [8, 224], strides = [1, 1]} : vector<8x256xbf16> to vector<8x224xbf16>
    %50 = tpu.concatenate %48, %49 in 1 : vector<8x32xbf16>, vector<8x224xbf16> -> vector<8x256xbf16>
    %cst_30 = arith.constant 0.000000e+00 : bf16
    %51 = vector.broadcast %cst_30 : bf16 to vector<8x32xbf16>
    %52 = vector.extract_strided_slice %45 {offsets = [0, 32], sizes = [8, 224], strides = [1, 1]} : vector<8x256xbf16> to vector<8x224xbf16>
    %53 = tpu.concatenate %52, %51 in 1 : vector<8x224xbf16>, vector<8x32xbf16> -> vector<8x256xbf16>
    %54 = tpu.concatenate %50, %45, %53 in 0 : vector<8x256xbf16>, vector<8x256xbf16>, vector<8x256xbf16> -> vector<24x256xbf16>
    %cst_31 = arith.constant dense<0.000000e+00> : vector<8x256xf32>
    %55 = tpu.matmul %47, %54, %cst_31 {dimension_numbers = #tpu.dot_dimension_numbers<[1], [0], [0], [1], [0, 0, 1, 1], [], []>} : vector<8x24xbf16>, vector<24x256xbf16>, vector<8x256xf32> -> vector<8x256xf32>
    %56 = arith.truncf %55 : vector<8x256xf32> to vector<8x256xbf16>
    %c3 = arith.constant 3 : index
    %c0_32 = arith.constant 0 : index
    %c0_33 = arith.constant 0 : index
    %57 = vector.load %arg3[%c3, %c0_32, %c0_33] : memref<4x8x24xbf16, #tpu.memory_space<vmem>>, vector<1x8x24xbf16>
    %58 = vector.shape_cast %57 : vector<1x8x24xbf16> to vector<8x24xbf16>
    %cst_34 = arith.constant 0.000000e+00 : bf16
    %59 = vector.broadcast %cst_34 : bf16 to vector<8x2xbf16>
    %60 = vector.extract_strided_slice %56 {offsets = [0, 0], sizes = [8, 254], strides = [1, 1]} : vector<8x256xbf16> to vector<8x254xbf16>
    %61 = tpu.concatenate %59, %60 in 1 : vector<8x2xbf16>, vector<8x254xbf16> -> vector<8x256xbf16>
    %c2_35 = arith.constant 2 : index
    %c0_36 = arith.constant 0 : index
    %62 = vector.load %arg5[%c2_35, %c0_36] : memref<4x256xbf16, #tpu.memory_space<vmem>>, vector<1x256xbf16>
    %63 = vector.broadcast %62 : vector<1x256xbf16> to vector<8x256xbf16>
    %64 = arith.mulf %61, %63 : vector<8x256xbf16>
    %cst_37 = arith.constant 0.000000e+00 : bf16
    %65 = vector.broadcast %cst_37 : bf16 to vector<8x2xbf16>
    %66 = vector.extract_strided_slice %56 {offsets = [0, 2], sizes = [8, 254], strides = [1, 1]} : vector<8x256xbf16> to vector<8x254xbf16>
    %67 = tpu.concatenate %66, %65 in 1 : vector<8x254xbf16>, vector<8x2xbf16> -> vector<8x256xbf16>
    %c3_38 = arith.constant 3 : index
    %c0_39 = arith.constant 0 : index
    %68 = vector.load %arg5[%c3_38, %c0_39] : memref<4x256xbf16, #tpu.memory_space<vmem>>, vector<1x256xbf16>
    %69 = vector.broadcast %68 : vector<1x256xbf16> to vector<8x256xbf16>
    %70 = arith.mulf %67, %69 : vector<8x256xbf16>
    %71 = tpu.concatenate %64, %56, %70 in 0 : vector<8x256xbf16>, vector<8x256xbf16>, vector<8x256xbf16> -> vector<24x256xbf16>
    %cst_40 = arith.constant dense<0.000000e+00> : vector<8x256xf32>
    %72 = tpu.matmul %58, %71, %cst_40 {dimension_numbers = #tpu.dot_dimension_numbers<[1], [0], [0], [1], [0, 0, 1, 1], [], []>} : vector<8x24xbf16>, vector<24x256xbf16>, vector<8x256xf32> -> vector<8x256xf32>
    %c2_41 = arith.constant 2 : index
    %c0_42 = arith.constant 0 : index
    %c0_43 = arith.constant 0 : index
    %73 = vector.load %arg4[%c2_41, %c0_42, %c0_43] : memref<3x8x1xf32, #tpu.memory_space<vmem>>, vector<1x8x1xf32>
    %74 = vector.shape_cast %73 : vector<1x8x1xf32> to vector<8x1xf32>
    %75 = vector.broadcast %74 : vector<8x1xf32> to vector<8x256xf32>
    %76 = arith.addf %72, %75 : vector<8x256xf32>
    %cst_44 = arith.constant 0.000000e+00 : f32
    %77 = vector.broadcast %cst_44 : f32 to vector<8x256xf32>
    %78 = arith.maximumf %76, %77 : vector<8x256xf32>
    %79 = tpu.concatenate %78, %1 in 0 : vector<8x256xf32>, vector<4x256xf32> -> vector<12x256xf32>
    %c0_45 = arith.constant 0 : index
    %c0_46 = arith.constant 0 : index
    %c0_47 = arith.constant 0 : index
    %80 = vector.load %arg6[%c0_45, %c0_46, %c0_47] : memref<1x12x256xf32, #tpu.memory_space<vmem>>, vector<1x12x256xf32>
    %81 = vector.shape_cast %80 : vector<1x12x256xf32> to vector<12x256xf32>
    %82 = vector.shape_cast %79 : vector<12x256xf32> to vector<1x12x256xf32>
    tpu.vector_store %arg6[%c0_45, %c0_46, %c0_47], %82 {strides = array<i32>} : memref<1x12x256xf32, #tpu.memory_space<vmem>>, vector<1x12x256xf32>,
    return
  }
  func.func @transform_0(%arg0: i32) -> (i32, i32, i32) {
    %c0_i32 = arith.constant 0 : i32
    %c0_i32_0 = arith.constant 0 : i32
    %c0_i32_1 = arith.constant 0 : i32
    return %arg0, %c0_i32, %c0_i32_0 : i32, i32, i32
  }
  func.func @transform_1(%arg0: i32) -> (i32, i32) {
    %c0_i32 = arith.constant 0 : i32
    %c0_i32_0 = arith.constant 0 : i32
    %c0_i32_1 = arith.constant 0 : i32
    return %c0_i32, %c0_i32_0 : i32, i32
  }
  func.func @transform_2(%arg0: i32) -> (i32, i32, i32) {
    %c0_i32 = arith.constant 0 : i32
    %c0_i32_0 = arith.constant 0 : i32
    %c0_i32_1 = arith.constant 0 : i32
    %c0_i32_2 = arith.constant 0 : i32
    return %c0_i32, %c0_i32_0, %c0_i32_1 : i32, i32, i32
  }
  func.func @transform_3(%arg0: i32) -> (i32, i32, i32) {
    %c0_i32 = arith.constant 0 : i32
    %c0_i32_0 = arith.constant 0 : i32
    %c0_i32_1 = arith.constant 0 : i32
    %c0_i32_2 = arith.constant 0 : i32
    return %c0_i32, %c0_i32_0, %c0_i32_1 : i32, i32, i32
  }
  func.func @transform_4(%arg0: i32) -> (i32, i32) {
    %c0_i32 = arith.constant 0 : i32
    %c0_i32_0 = arith.constant 0 : i32
    %c0_i32_1 = arith.constant 0 : i32
    return %c0_i32, %c0_i32_0 : i32, i32
  }
  func.func @transform_5(%arg0: i32) -> (i32, i32, i32) {
    %c0_i32 = arith.constant 0 : i32
    %c0_i32_0 = arith.constant 0 : i32
    %c0_i32_1 = arith.constant 0 : i32
    return %arg0, %c0_i32, %c0_i32_0 : i32, i32, i32
  }
}

</mosaic_0001>

<bundles_post_ra>
// kernel: tpu_custom_call.1
= control target key start
LH: loop header
LB: loop body
LE: loop exit
PB: predicated region body
PF: predicated region fallthrough
CT: control target
= control target key end

     0   :  { %s893_s18 = smov 0   ;;  %s977_s0 = inlined_call_operand.vmem [shape: f32[2,4,256], index: 0, kind: input, shape index: {}]   ;;  %s978_s1 = inlined_call_operand.vmem [shape: bf16[8,4], index: 1, kind: input, shape index: {}]   ;;  %s979_s2 = inlined_call_operand.vmem [shape: bf16[4,8,24], index: 2, kind: input, shape index: {}]   ;;  %s980_s3 = inlined_call_operand.vmem [shape: f32[3,8,1], index: 3, kind: input, shape index: {}]   ;;  %s981_s4 = inlined_call_operand.vmem [shape: bf16[4,256], index: 4, kind: input, shape index: {}]   ;;  %s982_s5 = inlined_call_operand.vmem [shape: f32[2,12,256], index: 5, kind: output, shape index: {}]  }
   0x1 LB: > { %s796_s19 = sadd.s32 4294967295, %s852_s18   ;;  %p800_p0 = scmp.ge.s32.totalorder %s852_s18, 1  ;;  %s852_s18 = sphi %s893_s18, %s15_s18  }
   0x2   : > { %p187_p1 = scmp.lt.s32.totalorder %s852_s18, 3 }
   0x4   : > { %p188_p2 = pnand %p800_p0, %p187_p1 }
   0x5   : > { %p215_p3 = scmp.lt.s32.totalorder (!%p188_p2), %s796_s19, 1  ;;  %v854_v0 = vmov (!%p188_p2), 0   ;;  %v233_v1 = vld [vmem:[%s980_s3] sm:$0xff] (!%p188_p2)  ;;  %vm243_vm0 = vcmask (!%p188_p2), 1041408   ;;  %vm239_vm1 = vcmask (!%p188_p2), 31744   ;;  %s855_s7 = smov (!%p188_p2), 16   ;;  %v407_v40 = vlaneseq (!%p188_p2) }
   0x6   : > { %191 = sbr.rel (%p188_p2) target bundleno = 1615 (0x64f), region = 40  ;;  %282 = vmatprep.mubr.bf16.mxu0 (!%p188_p2), %v854_v0  ;;  %843 = vset.pattern.permute.xlu0 (!%p188_p2), %v854_v0  ;;  %v232_v7 = vld [vmem:[%s978_s1] sm:$0xf] (!%p188_p2)  ;;  %s856_s8 = smov (!%p188_p2), 112   ;;  %vm302_vm2 = vcmask (!%p188_p2), 130048   ;;  %vm319_vm3 = vcmask (!%p188_p2), 1043456  }
   0x7   : > { %236 = vperm.xlu0 (!%p188_p2), %843, %v233_v1   ;;  %368 = vmatprep.mubr.bf16.mxu1 (!%p188_p2), %v854_v0  ;;  %vm312_vm4 = vcmask (!%p188_p2), 916480   ;;  %v295_v32 = vld [vmem:[%s979_s2] sm:$0xf] (!%p188_p2)  ;;  %vm327_vm5 = vcmask (!%p188_p2), 195584   ;;  %s857_s11 = smov (!%p188_p2), 1   ;;  %s858_s12 = smov (!%p188_p2), 127  }
   0x8   : > { %844 = vset.pattern.permute.xlu1 (!%p188_p2), %v854_v0  ;;  %v811_v39 = vld [vmem:[%s980_s3 + $0x8] sm:$0xff] (!%p188_p2)  ;;  %v810_v41 = vld.sshfl [vmem:[%s981_s4] sm:$0x11 pattern:$0x76325410] (!%p188_p2)  ;;  %v937_v42 = vshrl.u32 (!%p188_p2), %v407_v40, 7 }
   0x9   : > { %v403_v43 = vcombine.high (!%p188_p2), %v810_v41, %v810_v41  ;;  %v405_v44 = vpack.i.b16 (!%p188_p2), %v810_v41, %v810_v41  ;;  %v431_v47 = vshrl.u32 (!%p188_p2), %v810_v41, 16  ;;  %vm387_vm6 = vcmask (!%p188_p2), 7168   ;;  %s859_s20 = smov (!%p188_p2), 32   ;;  %s860_s21 = smov (!%p188_p2), 96   ;;  %v819_v40 = vld [vmem:[%s980_s3 + $0x10] sm:$0xff] (!%p188_p2) }
   0xa   : > { %v409_v45 = vsub.s32 (!%p188_p2), 0, %v937_v42  ;;  %vm424_vm7 = vcmask (!%p188_p2), 1039360   ;;  %vm526_vm8 = vcmask (!%p188_p2), 261120   ;;  %vm535_vm9 = vcmask (!%p188_p2), 785408   ;;  %s861_s24 = smov (!%p188_p2), 2   ;;  %s862_s25 = smov (!%p188_p2), 126  }
   0xb   : > { %v412_v46 = vpack.i.b16 (!%p188_p2), %v403_v43, %v403_v43  ;;  %v438_v48 = vshrl.u32 (!%p188_p2), %v403_v43, 16  ;;  %v432_v51 = vpack.i.b16 (!%p188_p2), %v431_v47, %v431_v47  ;;  %v818_v41 = vld.sshfl [vmem:[%s981_s4] sm:$0x22 pattern:$0x76325410] (!%p188_p2)  ;;  %vm608_vm10 = vcmask (!%p188_p2), 15360  }
   0xc   : > { %v410_v49 = vrot.slane (!%p188_p2), %v405_v44, %v409_v45  ;;  %v624_v43 = vcombine.high (!%p188_p2), %v818_v41, %v818_v41  ;;  %v626_v44 = vpack.i.b16 (!%p188_p2), %v818_v41, %v818_v41  ;;  %v652_v47 = vshrl.u32 (!%p188_p2), %v818_v41, 16 }
   0xd   : > { %s984_s19 = smov (!%p215_p3, %s796_s19), 1  ;;  %v417_v50 = vrot.slane %v412_v46, %v409_v45  ;;  %v439_v52 = vpack.i.b16 %v438_v48, %v438_v48  ;;  %v437_v60 = vrot.slane %v432_v51, %v409_v45  ;;  %vm645_vm11 = vcmask 1031168  }
   0xe   : > { %s824_s22 = sshll.u32 %s984_s19, 3  ;;  %s825_s23 = sshll.u32 %s984_s19, 5  ;;  %v633_v46 = vpack.i.b16 %v624_v43, %v624_v43  ;;  %v659_v48 = vshrl.u32 %v624_v43, 16  ;;  %v653_v51 = vpack.i.b16 %v652_v47, %v652_v47 }
   0xf   : > { %s219_s26 = scalar_lea.vmem %s977_s0, %s824_s22  ;;  %s914_s29 = scalar_lea.vmem %s982_s5, %s825_s23  ;;  %v444_v61 = vrot.slane %v439_v52, %v409_v45  ;;  %v630_v45 = vsub.s32 1, %v937_v42 }
  0x10   : > { %v226_v2 = vld [vmem:[%s219_s26] sm:$0xff]  ;;  %v660_v52 = vpack.i.b16 %v659_v48, %v659_v48 }
  0x11   : > { %v228_v3 = vcombine.high %v226_v2, %v226_v2  ;;  %739 = vst [vmem:[%s914_s29 + $0x10] sm:$0xf] %v226_v2  ;;  %v230_v4 = vpack.c.bf16 %v226_v2, %v226_v2 }
  0x13   : > { %v231_v5 = vpack.c.bf16 %v228_v3, %v228_v3  ;;  %740 = vst [vmem:[%s914_s29 + $0x18] sm:$0xf] %v228_v3  ;;  %v245_v6 = vsel %vm243_vm0, %v230_v4, 0 }
  0x15   : > { %805 = vmatprep.subr.msk.bf16.mxu0 %vm243_vm0, %v231_v5 }
  0x16   : > { %251 = vmatpush1.bf16.msra.mxu0 %v245_v6 }
  0x19   : > { %806 = vmatmul.mubr.msk.bf16.vlgmr.msra.gmra.mrb[0].mxu0 %vm239_vm1, %v232_v7 }
  0x1a   : > { %505 = vmatprep.mubr.bf16.mxu0 %v854_v0 }
  0x86   : > { %v237_v8 = vpop.permute.xlu0 %236 }
  0xec   : > { %v284_v9 = vpop.f32.mrb[0].mxu0 }
  0xed   : > { %v285_v10 = vadd.f32 %v284_v9, %v237_v8  ;;  %v286_v11 = vpop.f32.mrb[1].mxu0  ;;  %v809_v9 = vld [vmem:[%s979_s2 + $0x4] sm:$0xf] }
  0xee   : > { %v287_v12 = vadd.f32 %v286_v11, %v237_v8  ;;  %v288_v13 = vpop.f32.mrb[2].mxu0 }
  0xef   : > { %v291_v14 = vmax.f32 %v285_v10, 0.0  ;;  %v289_v15 = vpop.f32.mrb[3].mxu0 }
  0xf0   : > { %v292_v16 = vmax.f32 %v287_v12, 0.0 }
  0xf1   : > { %v293_v17 = vpack.c.bf16 %v291_v14, %v291_v14 }
  0xf2   : > { %v294_v18 = vpack.c.bf16 %v292_v16, %v292_v16 }
  0xf3   : > { %298 = vrot.lane.b32.xlu0 %v293_v17, %s855_s7  ;;  %v317_v24 = vrot.slane %v293_v17, 4 }
  0xf4   : > { %300 = vrot.lane.b32.xlu1 %v294_v18, %s855_s7  ;;  %v318_v22 = vrot.slane %v294_v18, 4 }
  0xf7   : > { %310 = vrot.lane.b32.xlu0 %v294_v18, %s856_s8 }
  0xf8   : > { %308 = vrot.lane.b32.xlu1 %v293_v17, %s856_s8 }
 0x165   : > { %v299_v19 = vpop.permute.xlu0 %298 }
 0x166   : > { %v307_v20 = vsel %vm302_vm2, 0, %v299_v19  ;;  %v301_v21 = vpop.permute.xlu1 %300 }
 0x167   : > { %v303_v23 = vsel %vm302_vm2, %v299_v19, %v301_v21  ;;  %v321_v27 = vsel %vm319_vm3, %v307_v20, %v317_v24 }
 0x168   : > { %v325_v25 = vsel %vm319_vm3, %v303_v23, %v318_v22 }
 0x169   : > { %336 = vmatprep.subr.bf16.mxu1 %v325_v25  ;;  %v311_v26 = vpop.permute.xlu0 %310 }
 0x16a   : > { %v316_v28 = vsel %vm312_vm4, %v311_v26, 0  ;;  %v309_v29 = vpop.permute.xlu1 %308  ;;  %337 = vmatpush1.bf16.msra.mxu1 %v321_v27 }
 0x16b   : > { %v313_v30 = vsel %vm312_vm4, %v309_v29, %v311_v26  ;;  %807 = vmatprep.subr.msk.bf16.mxu1 %vm319_vm3, %v316_v28 }
 0x16c   : > { %v332_v31 = vsel %vm319_vm3, %v313_v30, 0 }
 0x16e   : > { %339 = vmatpush1.bf16.msra.mxu1 %v332_v31 }
 0x171   : > { %808 = vmatmul.mubr.msk.bf16.vlgmr.msra.gmra.mrb[0].mxu1 %vm327_vm5, %v295_v32 }
 0x172   : > { %589 = vmatprep.mubr.bf16.mxu1 %v854_v0 }
 0x244   : > { %v370_v33 = vpop.f32.mrb[0].mxu1 }
 0x245   : > { %v377_v34 = vpack.c.bf16 %v370_v33, %v370_v33  ;;  %v372_v35 = vpop.f32.mrb[1].mxu1  ;;  %v814_v33 = vld [vmem:[%s979_s2 + $0x8] sm:$0xf] }
 0x246   : > { %v378_v36 = vpack.c.bf16 %v372_v35, %v372_v35  ;;  %v374_v37 = vpop.f32.mrb[2].mxu1 }
 0x247   : > { %383 = vrot.lane.b32.xlu1 %v377_v34, %s857_s11  ;;  %v375_v38 = vpop.f32.mrb[3].mxu1  ;;  %v447_v62 = vrot.slane %v377_v34, 4 }
 0x248   : > { %385 = vrot.lane.b32.xlu0 %v378_v36, %s857_s11  ;;  %v448_v58 = vrot.slane %v378_v36, 4 }
 0x24b   : > { %420 = vrot.lane.b32.xlu1 %v377_v34, %s858_s12 }
 0x24c   : > { %422 = vrot.lane.b32.xlu0 %v378_v36, %s858_s12 }
 0x24f   : > { %461 = vperm.xlu1 %844, %v811_v39  }
 0x2b9   : > { %v384_v53 = vpop.permute.xlu1 %383 }
 0x2ba   : > { %v392_v54 = vsel %vm387_vm6, 0, %v384_v53  ;;  %v386_v55 = vpop.permute.xlu0 %385 }
 0x2bb   : > { %v418_v56 = vmul.bf16 %v410_v49, %v392_v54  ;;  %v388_v57 = vsel %vm387_vm6, %v384_v53, %v386_v55  ;;  %v631_v49 = vrot.slane %v626_v44, %v630_v45 }
 0x2bc   : > { %v419_v59 = vmul.bf16 %v417_v50, %v388_v57  ;;  %v638_v50 = vrot.slane %v633_v46, %v630_v45 }
 0x2bd   : > { %v421_v63 = vpop.permute.xlu1 %420  ;;  %v451_v5 = vsel %vm319_vm3, %v418_v56, %v447_v62 }
 0x2be   : > { %v423_v1 = vpop.permute.xlu0 %422  ;;  %v455_v2 = vsel %vm319_vm3, %v419_v59, %v448_v58 }
 0x2bf   : > { %v425_v3 = vsel %vm424_vm7, %v421_v63, %v423_v1  ;;  %v429_v4 = vsel %vm424_vm7, %v423_v1, 0  ;;  %473 = vmatprep.subr.bf16.mxu0 %v455_v2 }
 0x2c0   : > { %v445_v6 = vmul.bf16 %v437_v60, %v425_v3  ;;  %v446_v7 = vmul.bf16 %v444_v61, %v429_v4  ;;  %474 = vmatpush1.bf16.msra.mxu0 %v451_v5  ;;  %v658_v60 = vrot.slane %v653_v51, %v630_v45  ;;  %v665_v61 = vrot.slane %v660_v52, %v630_v45 }
 0x2c2   : > { %812 = vmatprep.subr.msk.bf16.mxu0 %vm319_vm3, %v446_v7  ;;  %v468_v8 = vsel %vm319_vm3, %v445_v6, 0 }
 0x2c4   : > { %476 = vmatpush1.bf16.msra.mxu0 %v468_v8  ;;  %v817_v8 = vld [vmem:[%s979_s2 + $0xc] sm:$0xf] }
 0x2c7   : > { %813 = vmatmul.mubr.msk.bf16.vlgmr.msra.gmra.mrb[4].mxu0 %vm327_vm5, %v809_v9 }
 0x2c8   : > { %726 = vmatprep.mubr.bf16.mxu0 %v854_v0 }
 0x2ce   : > { %v462_v10 = vpop.permute.xlu1 %461 }
 0x39a   : > { %v507_v11 = vpop.f32.mrb[4].mxu0 }
 0x39b   : > { %v508_v12 = vadd.f32 %v507_v11, %v462_v10  ;;  %v509_v13 = vpop.f32.mrb[5].mxu0 }
 0x39c   : > { %v510_v14 = vadd.f32 %v509_v13, %v462_v10  ;;  %v511_v15 = vpop.f32.mrb[6].mxu0 }
 0x39d   : > { %v514_v16 = vmax.f32 %v508_v12, 0.0  ;;  %v512_v17 = vpop.f32.mrb[7].mxu0 }
 0x39e   : > { %v515_v18 = vmax.f32 %v510_v14, 0.0 }
 0x39f   : > { %v516_v19 = vpack.c.bf16 %v514_v16, %v514_v16 }
 0x3a0   : > { %v517_v20 = vpack.c.bf16 %v515_v18, %v515_v18 }
 0x3a1   : > { %522 = vrot.lane.b32.xlu0 %v516_v19, %s859_s20  ;;  %v540_v24 = vrot.slane %v516_v19, 4 }
 0x3a2   : > { %524 = vrot.lane.b32.xlu1 %v517_v20, %s859_s20  ;;  %v541_v0 = vrot.slane %v517_v20, 4 }
 0x3a5   : > { %531 = vrot.lane.b32.xlu0 %v516_v19, %s860_s21 }
 0x3a6   : > { %533 = vrot.lane.b32.xlu1 %v517_v20, %s860_s21 }
 0x413   : > { %v523_v21 = vpop.permute.xlu0 %522 }
 0x414   : > { %v530_v22 = vsel %vm526_vm8, 0, %v523_v21  ;;  %v525_v23 = vpop.permute.xlu1 %524 }
 0x415   : > { %v527_v25 = vsel %vm526_vm8, %v523_v21, %v525_v23  ;;  %v543_v28 = vsel %vm319_vm3, %v530_v22, %v540_v24 }
 0x416   : > { %v547_v26 = vsel %vm319_vm3, %v527_v25, %v541_v0 }
 0x417   : > { %557 = vmatprep.subr.bf16.mxu1 %v547_v26  ;;  %v532_v27 = vpop.permute.xlu0 %531 }
 0x418   : > { %v534_v29 = vpop.permute.xlu1 %533  ;;  %558 = vmatpush1.bf16.msra.mxu1 %v543_v28 }
 0x419   : > { %v536_v30 = vsel %vm535_vm9, %v532_v27, %v534_v29  ;;  %v539_v31 = vsel %vm535_vm9, %v534_v29, 0 }
 0x41a   : > { %v553_v32 = vsel %vm319_vm3, %v536_v30, 0  ;;  %815 = vmatprep.subr.msk.bf16.mxu1 %vm319_vm3, %v539_v31 }
 0x41c   : > { %560 = vmatpush1.bf16.msra.mxu1 %v553_v32 }
 0x41f   : > { %816 = vmatmul.mubr.msk.bf16.vlgmr.msra.gmra.mrb[4].mxu1 %vm327_vm5, %v814_v33 }
 0x4f2   : > { %v591_v34 = vpop.f32.mrb[4].mxu1 }
 0x4f3   : > { %v598_v35 = vpack.c.bf16 %v591_v34, %v591_v34  ;;  %v593_v36 = vpop.f32.mrb[5].mxu1 }
 0x4f4   : > { %v599_v37 = vpack.c.bf16 %v593_v36, %v593_v36  ;;  %v595_v38 = vpop.f32.mrb[6].mxu1 }
 0x4f5   : > { %604 = vrot.lane.b32.xlu0 %v598_v35, %s861_s24  ;;  %v596_v39 = vpop.f32.mrb[7].mxu1  ;;  %v668_v62 = vrot.slane %v598_v35, 4 }
 0x4f6   : > { %606 = vrot.lane.b32.xlu1 %v599_v37, %s861_s24  ;;  %v669_v58 = vrot.slane %v599_v37, 4 }
 0x4f9   : > { %641 = vrot.lane.b32.xlu0 %v598_v35, %s862_s25 }
 0x4fa   : > { %643 = vrot.lane.b32.xlu1 %v599_v37, %s862_s25 }
 0x4fd   : > { %682 = vperm.xlu0 %843, %v819_v40  }
 0x567   : > { %v605_v53 = vpop.permute.xlu0 %604 }
 0x568   : > { %v613_v54 = vsel %vm608_vm10, 0, %v605_v53  ;;  %v607_v55 = vpop.permute.xlu1 %606 }
 0x569   : > { %v639_v56 = vmul.bf16 %v631_v49, %v613_v54  ;;  %v609_v57 = vsel %vm608_vm10, %v605_v53, %v607_v55 }
 0x56a   : > { %v640_v59 = vmul.bf16 %v638_v50, %v609_v57 }
 0x56b   : > { %v642_v42 = vpop.permute.xlu0 %641  ;;  %v672_v4 = vsel %vm319_vm3, %v639_v56, %v668_v62 }
 0x56c   : > { %v644_v63 = vpop.permute.xlu1 %643  ;;  %v676_v1 = vsel %vm319_vm3, %v640_v59, %v669_v58 }
 0x56d   : > { %v646_v2 = vsel %vm645_vm11, %v642_v42, %v644_v63  ;;  %v650_v3 = vsel %vm645_vm11, %v644_v63, 0  ;;  %694 = vmatprep.subr.bf16.mxu0 %v676_v1 }
 0x56e   : > { %v666_v5 = vmul.bf16 %v658_v60, %v646_v2  ;;  %v667_v6 = vmul.bf16 %v665_v61, %v650_v3  ;;  %695 = vmatpush1.bf16.msra.mxu0 %v672_v4 }
 0x570   : > { %820 = vmatprep.subr.msk.bf16.mxu0 %vm319_vm3, %v667_v6  ;;  %v689_v7 = vsel %vm319_vm3, %v666_v5, 0 }
 0x572   : > { %697 = vmatpush1.bf16.msra.mxu0 %v689_v7 }
 0x575   : > { %821 = vmatmul.mubr.msk.bf16.vlgmr.msra.gmra.mrb[8].mxu0 %vm327_vm5, %v817_v8 }
 0x57c   : > { %v683_v9 = vpop.permute.xlu0 %682 }
 0x648   : > { %v728_v10 = vpop.f32.mrb[8].mxu0 }
 0x649   : > { %v729_v11 = vadd.f32 %v728_v10, %v683_v9  ;;  %v730_v12 = vpop.f32.mrb[9].mxu0 }
 0x64a   : > { %v731_v13 = vadd.f32 %v730_v12, %v683_v9  ;;  %v732_v14 = vpop.f32.mrb[10].mxu0 }
 0x64b   : > { %v735_v15 = vmax.f32 %v729_v11, 0.0  ;;  %v733_v16 = vpop.f32.mrb[11].mxu0 }
 0x64c   : > { %v736_v17 = vmax.f32 %v731_v13, 0.0 }
 0x64d   : > { %737 = vst [vmem:[%s914_s29] sm:$0xff] %v735_v15 }
 0x64e   : > { %738 = vst [vmem:[%s914_s29 + $0x8] sm:$0xff] %v736_v17 }
 0x64f PF: > { %s15_s18 = sadd.s32 1, %s852_s18  }
 0x650   : > { %p12_p4 = scmp.ge.s32.totalorder %s15_s18, 4  }
 0x652   :  { %14 = sbr.rel (!%p12_p4) target bundleno = 1 (0x1), region = 75 }

</bundles_post_ra>
